<compile_context>
chip_gen: v7x
topology: tpu7x:2x2x1
jax: 0.10.0
libtpu: 0.0.40
codegen_flags: <defaults>
</compile_context>

<pallas_src>
import functools

import jax
import jax.numpy as jnp
from jax.experimental import pallas as pl
from jax.experimental.pallas import tpu as pltpu


# ---------------------------------------------------------------------------
# Kernels
# ---------------------------------------------------------------------------

def _ca_batched_kernel(x_ref, w1_ref, w2_ref, o_ref):
    """Small-HW regime: Bn whole images per grid step, lane-dense (Bn, C) output.

    x_ref:  (Bn, C, HW) native dtype
    w1_ref: (Cr, C)  fc1 weight (Conv2d layout, squeezed)
    w2_ref: (C, Cr)  fc2 weight
    o_ref:  (Bn, C)  per-image channel attention
    """
    x = x_ref[...].astype(jnp.float32)               # (Bn, C, HW)
    avg = jnp.mean(x, axis=-1)                       # (Bn, C)
    mx = jnp.max(x, axis=-1)                         # (Bn, C)
    pooled = jnp.concatenate([avg, mx], axis=0)      # (2*Bn, C): one fused fc1 dot

    w1 = w1_ref[...].astype(jnp.float32)             # (Cr, C)
    w2 = w2_ref[...].astype(jnp.float32)             # (C, Cr)
    dn = (((1,), (1,)), ((), ()))                    # contract the channel-like dim

    h = jnp.maximum(
        jax.lax.dot_general(pooled, w1, dn, preferred_element_type=jnp.float32),
        0.0)                                         # (2*Bn, Cr)
    bn = x.shape[0]
    h_sum = h[:bn] + h[bn:]                          # (Bn, Cr): fc2 linearity fold
    y = jax.lax.dot_general(h_sum, w2, dn,
                            preferred_element_type=jnp.float32)  # (Bn, C)
    o_ref[...] = jax.nn.sigmoid(y).astype(o_ref.dtype)


def _ca_tiled_kernel(x_ref, w1_ref, w2_ref, o_ref, sum_acc, max_acc,
                     *, hw, tile_hw):
    """Streaming regime: grid (N, HW_tiles); f32 accumulators in VMEM scratch.

    x_ref:   (1, C, TILE_HW) tile of the input (native dtype)
    o_ref:   (1, C, 1) per-image output (written on the last HW tile)
    sum_acc / max_acc: (C, 1) f32 running accumulators.
    """
    s = pl.program_id(1)
    n_s = pl.num_programs(1)

    @pl.when(s == 0)
    def _init():
        sum_acc[...] = jnp.zeros_like(sum_acc)
        max_acc[...] = jnp.full_like(max_acc, -jnp.inf)

    use_mxu_sum = x_ref.dtype == jnp.bfloat16        # static (trace-time) branch

    def accumulate_full():
        x = x_ref[0]                                 # (C, TILE_HW), native dtype
        if use_mxu_sum:
            # bf16 * 1.0 with f32 MXU accumulation is exact; keeps the add tree
            # off the VPU (which starts to co-bind with DMA on v7x HBM).
            ones = jnp.ones((tile_hw, 1), dtype=x.dtype)
            part = jnp.dot(x, ones, preferred_element_type=jnp.float32)   # (C, 1)
        else:
            # f32 input: no cast needed; plain f32 lane-reduce is exact.
            part = jnp.sum(x.astype(jnp.float32), axis=-1, keepdims=True)
        sum_acc[...] += part
        # max is exact in the native dtype; only the tiny (C, 1) result is upcast.
        max_acc[...] = jnp.maximum(
            max_acc[...],
            jnp.max(x, axis=-1, keepdims=True).astype(jnp.float32))

    def accumulate_masked():
        # Only the final (partial) tile pays for iota + compare + selects.
        x = x_ref[0].astype(jnp.float32)
        lane = jax.lax.broadcasted_iota(jnp.int32, x.shape, 1)
        valid = (s * tile_hw + lane) < hw
        sum_acc[...] += jnp.sum(jnp.where(valid, x, 0.0), axis=-1, keepdims=True)
        max_acc[...] = jnp.maximum(
            max_acc[...],
            jnp.max(jnp.where(valid, x, -jnp.inf), axis=-1, keepdims=True))

    if hw % tile_hw == 0:
        accumulate_full()
    else:
        pl.when(s < n_s - 1)(accumulate_full)
        pl.when(s == n_s - 1)(accumulate_masked)

    @pl.when(s == n_s - 1)
    def _finalize():
        avg = sum_acc[...] * (1.0 / hw)                            # (C, 1)
        pooled = jnp.concatenate([avg, max_acc[...]], axis=1)      # (C, 2)
        w1 = w1_ref[...].astype(jnp.float32)                       # (Cr, C)
        w2 = w2_ref[...].astype(jnp.float32)                       # (C, Cr)
        h = jnp.maximum(
            jnp.dot(w1, pooled, preferred_element_type=jnp.float32), 0.0)  # (Cr, 2)
        h_sum = h[:, 0:1] + h[:, 1:2]                              # (Cr, 1) fold
        y = jnp.dot(w2, h_sum, preferred_element_type=jnp.float32)  # (C, 1)
        o_ref[0] = jax.nn.sigmoid(y).astype(o_ref.dtype)


# ---------------------------------------------------------------------------
# Sizing helpers (generation-aware)
# ---------------------------------------------------------------------------

def _physical_vmem_bytes():
    """Per-core physical VMEM; clamps to [64, 128] MiB; safe fallback = 64 MiB."""
    phys = 0
    try:
        info = pltpu.get_tpu_info()
        phys = int(getattr(info, "vmem_capacity_bytes", 0) or 0)
    except Exception:
        phys = 0
    if phys <= 0:
        phys = 64 * 1024 * 1024          # v7x physical; lower bound across gens
    return min(max(phys, 64 * 1024 * 1024), 128 * 1024 * 1024)


def _vmem_limit_bytes(plan_bytes, phys_vmem):
    """Explicit scoped-VMEM request: plan + headroom, capped at ~90% physical."""
    want = max(plan_bytes + (4 << 20), 16 << 20)
    return int(min(want, int(phys_vmem * 0.9)))


def _choose_tile_hw(hw, c, itemsize, x_budget):
    """Prefer a full-HW contiguous slab; otherwise the largest 128-multiple tile
    whose 3-deep pipeline fits the input-buffer budget."""
    slab = c * hw * itemsize
    if 2 * slab <= x_budget or hw <= 512:
        return hw                        # single contiguous DMA, no masking
    depth = 3                            # strided tiles get a 3-deep pipeline
    max_tile = max(128, x_budget // (depth * c * itemsize))
    tile = max(512, (min(hw, max_tile) // 128) * 128)
    return max(128, min(tile, (hw // 128) * 128))


def _x_block_spec(block_shape, index_map, buffers):
    """BlockSpec with optional deeper pipelining; falls back if unsupported."""
    if buffers is None:
        return pl.BlockSpec(block_shape, index_map)
    try:
        return pl.BlockSpec(block_shape, index_map,
                            pipeline_mode=pl.Buffered(buffers))
    except (TypeError, AttributeError):
        return pl.BlockSpec(block_shape, index_map)


# ---------------------------------------------------------------------------
# Wrapper
# ---------------------------------------------------------------------------

def channel_attention(x_nchw, w1, w2, *, tile_hw=None):
    """x_nchw: (N, C, H, W); w1: (Cr, C) = fc1 weight; w2: (C, Cr) = fc2 weight.
    Returns (N, C, 1, 1) attention map, matching the PyTorch module."""
    N, C, H, W = x_nchw.shape
    Cr, C1 = w1.shape
    assert C1 == C and w2.shape == (C, Cr)
    HW = H * W

    # Stream x in its native dtype: reshape only, no upcast copy in HBM.
    x_flat = x_nchw.reshape(N, C, HW)
    itemsize = jnp.dtype(x_flat.dtype).itemsize

    phys_vmem = _physical_vmem_bytes()
    x_budget = int(phys_vmem * 0.45)      # budget for the streamed input buffers

    if tile_hw is None:
        tile_hw = _choose_tile_hw(HW, C, itemsize, x_budget)
    tile_hw = int(min(tile_hw, HW))

    w_bytes = 2 * (w1.size * jnp.dtype(w1.dtype).itemsize
                   + w2.size * jnp.dtype(w2.dtype).itemsize)

    # ---- Regime A: HW fits one tile -> batch Bn images per step --------------
    if tile_hw == HW:
        slab = C * HW * itemsize
        # Sublane packing of the (Bn, C) output block: 8 f32 / 16 bf16 / 32 int8.
        pack = max(1, 4 // itemsize) * 8
        bn = 0
        if 2 <= N <= pack and 2 * N * slab <= x_budget:
            bn = N
        elif N > pack and 2 * pack * slab <= x_budget:
            bn = pack
        if bn:
            plan = 2 * bn * slab + w_bytes + 2 * bn * C * itemsize
            out = pl.pallas_call(
                _ca_batched_kernel,
                out_shape=jax.ShapeDtypeStruct((N, C), x_flat.dtype),
                grid_spec=pltpu.PrefetchScalarGridSpec(
                    num_scalar_prefetch=0,
                    grid=(pl.cdiv(N, bn),),
                    in_specs=[
                        pl.BlockSpec((bn, C, HW), lambda i: (i, 0, 0)),
                        pl.BlockSpec((Cr, C), lambda i: (0, 0)),   # resident
                        pl.BlockSpec((C, Cr), lambda i: (0, 0)),   # resident
                    ],
                    out_specs=pl.BlockSpec((bn, C), lambda i: (i, 0)),  # lane-dense
                ),
                compiler_params=pltpu.CompilerParams(
                    dimension_semantics=("parallel",),
                    vmem_limit_bytes=_vmem_limit_bytes(plan, phys_vmem)),
            )(x_flat, w1, w2)
            return out.reshape(N, C, 1, 1)

    # ---- Regime B: streaming reduction over HW tiles --------------------------
    n_hw_tiles = pl.cdiv(HW, tile_hw)
    strided = tile_hw < HW
    depth = 3 if strided else 2           # extra buffer only for strided tiles
    plan = (depth * C * tile_hw * itemsize + w_bytes
            + 2 * C * itemsize + 2 * C * 4)

    kernel = functools.partial(_ca_tiled_kernel, hw=HW, tile_hw=tile_hw)

    out = pl.pallas_call(
        kernel,
        out_shape=jax.ShapeDtypeStruct((N, C, 1), x_flat.dtype),
        grid_spec=pltpu.PrefetchScalarGridSpec(
            num_scalar_prefetch=0,
            grid=(N, n_hw_tiles),
            in_specs=[
                _x_block_spec((1, C, tile_hw), lambda n, s: (n, 0, s),
                              buffers=3 if strided else None),
                pl.BlockSpec((Cr, C), lambda n, s: (0, 0)),        # resident
                pl.BlockSpec((C, Cr), lambda n, s: (0, 0)),        # resident
            ],
            out_specs=pl.BlockSpec((1, C, 1), lambda n, s: (n, 0, 0)),
            scratch_shapes=[
                pltpu.VMEM((C, 1), jnp.float32),   # running sum
                pltpu.VMEM((C, 1), jnp.float32),   # running max
            ],
        ),
        compiler_params=pltpu.CompilerParams(
            dimension_semantics=("parallel", "arbitrary"),
            vmem_limit_bytes=_vmem_limit_bytes(plan, phys_vmem)),
    )(x_flat, w1, w2)

    return out.reshape(N, C, 1, 1)


def channel_attention_ref(x_nchw, w1, w2):
    """Pure-JAX reference mirroring the PyTorch forward."""
    xf = x_nchw.astype(jnp.float32)
    avg = jnp.mean(xf, axis=(2, 3))            # (N, C)
    mx = jnp.max(xf, axis=(2, 3))              # (N, C)
    w1f = w1.astype(jnp.float32)
    w2f = w2.astype(jnp.float32)

    def mlp(v):
        h = jnp.maximum(v @ w1f.T, 0.0)        # (N, Cr)
        return h @ w2f.T                       # (N, C)

    out = jax.nn.sigmoid(mlp(avg) + mlp(mx))
    return out[:, :, None, None].astype(x_nchw.dtype)


if __name__ == "__main__":
    key = jax.random.PRNGKey(0)
    ks = jax.random.split(key, 10)

    # Case 1: small shapes -> batched regime (grid over N, Bn = N = 2,
    # lane-dense (N, C) output, fused fc1/fc2 epilogue).
    N, C, ratio, H, W = 2, 16, 8, 16, 16
    Cr = C // ratio
    x = jax.random.normal(ks[0], (N, C, H, W), dtype=jnp.float32)
    w1 = jax.random.normal(ks[1], (Cr, C), dtype=jnp.float32) * 0.1
    w2 = jax.random.normal(ks[2], (C, Cr), dtype=jnp.float32) * 0.1
    out = jax.block_until_ready(channel_attention(x, w1, w2))
    ref = channel_attention_ref(x, w1, w2)
    assert out.shape == (N, C, 1, 1)
    assert jnp.allclose(out, ref, atol=1e-5, rtol=1e-5), "case 1 mismatch vs reference"

    # Case 2: HW = 18*18 = 324 with a forced 128-lane tile -> streaming regime,
    # 3 tiles per image, masking only on the last (partial) tile.
    N2, C2, ratio2, H2, W2 = 2, 32, 8, 18, 18
    Cr2 = C2 // ratio2
    x2 = jax.random.normal(ks[3], (N2, C2, H2, W2), dtype=jnp.float32)
    w1b = jax.random.normal(ks[4], (Cr2, C2), dtype=jnp.float32) * 0.1
    w2b = jax.random.normal(ks[5], (C2, Cr2), dtype=jnp.float32) * 0.1
    out2 = jax.block_until_ready(channel_attention(x2, w1b, w2b, tile_hw=128))
    ref2 = channel_attention_ref(x2, w1b, w2b)
    assert out2.shape == (N2, C2, 1, 1)
    assert jnp.allclose(out2, ref2, atol=1e-5, rtol=1e-5), "case 2 mismatch vs reference"

    # Case 3: N = 1 -> streaming regime with a single full-HW tile
    # (init + accumulate + finalize in one grid step).
    x3 = jax.random.normal(ks[6], (1, C, H, W), dtype=jnp.float32)
    out3 = jax.block_until_ready(channel_attention(x3, w1, w2))
    ref3 = channel_attention_ref(x3, w1, w2)
    assert out3.shape == (1, C, 1, 1)
    assert jnp.allclose(out3, ref3, atol=1e-5, rtol=1e-5), "case 3 mismatch vs reference"

    # Case 4: bf16 input on the tiled path -> native-dtype max + MXU ones-dot sum
    # with f32 accumulation, masked last tile.
    x4 = jax.random.normal(ks[7], (N2, C2, H2, W2), dtype=jnp.float32).astype(jnp.bfloat16)
    w1c = (jax.random.normal(ks[8], (Cr2, C2), dtype=jnp.float32) * 0.1).astype(jnp.bfloat16)
    w2c = (jax.random.normal(ks[9], (C2, Cr2), dtype=jnp.float32) * 0.1).astype(jnp.bfloat16)
    out4 = jax.block_until_ready(channel_attention(x4, w1c, w2c, tile_hw=128))
    ref4 = channel_attention_ref(x4, w1c, w2c)
    assert out4.shape == (N2, C2, 1, 1) and out4.dtype == jnp.bfloat16
    assert jnp.allclose(out4.astype(jnp.float32), ref4.astype(jnp.float32),
                        atol=1e-2, rtol=1e-2), "case 4 mismatch vs reference"

    print("KERNEL_OK")
</pallas_src>

<mosaic_0001>
module attributes {stable_mosaic.version = 11 : i64} {
  func.func @_ca_batched_kernel(%arg0: i32, %arg1: memref<2x16x256xf32, #tpu.memory_space<vmem>>, %arg2: memref<2x16xf32, #tpu.memory_space<vmem>>, %arg3: memref<16x2xf32, #tpu.memory_space<vmem>>, %arg4: memref<2x16xf32, #tpu.memory_space<vmem>>) attributes {dimension_semantics = [#tpu.dimension_semantics<parallel>], iteration_bounds = array<i64: 1>, scalar_prefetch = 0 : i64, scratch_operands = 0 : i64, tpu.core_type = #tpu.core_type<tc>, window_params = [{transform_indices = @transform_0, window_bounds = array<i64: 2, 16, 256>}, {pipeline_mode = #tpu.pipeline_mode<synchronous>, transform_indices = @transform_1, window_bounds = array<i64: 2, 16>}, {pipeline_mode = #tpu.pipeline_mode<synchronous>, transform_indices = @transform_2, window_bounds = array<i64: 16, 2>}, {transform_indices = @transform_3, window_bounds = array<i64: 2, 16>}]} {
    %c0 = arith.constant 0 : index
    %c0_0 = arith.constant 0 : index
    %c0_1 = arith.constant 0 : index
    %0 = vector.load %arg1[%c0, %c0_0, %c0_1] : memref<2x16x256xf32, #tpu.memory_space<vmem>>, vector<2x16x256xf32>
    %cst = arith.constant dense<0.000000e+00> : vector<2x16xf32>
    %1 = vector.multi_reduction <add>, %0, %cst [2] : vector<2x16x256xf32> to vector<2x16xf32>
    %cst_2 = arith.constant 2.560000e+02 : f32
    %2 = vector.broadcast %cst_2 : f32 to vector<2x16xf32>
    %3 = arith.divf %1, %2 : vector<2x16xf32>
    %cst_3 = arith.constant dense<0xFF800000> : vector<2x16xf32>
    %4 = vector.multi_reduction <maximumf>, %0, %cst_3 [2] : vector<2x16x256xf32> to vector<2x16xf32>
    %5 = tpu.concatenate %3, %4 in 0 : vector<2x16xf32>, vector<2x16xf32> -> vector<4x16xf32>
    %c0_4 = arith.constant 0 : index
    %c0_5 = arith.constant 0 : index
    %6 = vector.load %arg2[%c0_4, %c0_5] : memref<2x16xf32, #tpu.memory_space<vmem>>, vector<2x16xf32>
    %c0_6 = arith.constant 0 : index
    %c0_7 = arith.constant 0 : index
    %7 = vector.load %arg3[%c0_6, %c0_7] : memref<16x2xf32, #tpu.memory_space<vmem>>, vector<16x2xf32>
    %cst_8 = arith.constant dense<0.000000e+00> : vector<4x2xf32>
    %8 = tpu.matmul %5, %6, %cst_8 {dimension_numbers = #tpu.dot_dimension_numbers<[1], [1], [0], [0], [0, 0, 1, 0], [], []>} : vector<4x16xf32>, vector<2x16xf32>, vector<4x2xf32> -> vector<4x2xf32>
    %cst_9 = arith.constant 0.000000e+00 : f32
    %9 = vector.broadcast %cst_9 : f32 to vector<4x2xf32>
    %10 = arith.maximumf %8, %9 : vector<4x2xf32>
    %11 = vector.extract_strided_slice %10 {offsets = [0, 0], sizes = [2, 2], strides = [1, 1]} : vector<4x2xf32> to vector<2x2xf32>
    %12 = vector.extract_strided_slice %10 {offsets = [2, 0], sizes = [2, 2], strides = [1, 1]} : vector<4x2xf32> to vector<2x2xf32>
    %13 = arith.addf %11, %12 : vector<2x2xf32>
    %cst_10 = arith.constant dense<0.000000e+00> : vector<2x16xf32>
    %14 = tpu.matmul %13, %7, %cst_10 {dimension_numbers = #tpu.dot_dimension_numbers<[1], [1], [0], [0], [0, 0, 1, 0], [], []>} : vector<2x2xf32>, vector<16x2xf32>, vector<2x16xf32> -> vector<2x16xf32>
    %15 = arith.negf %14 : vector<2x16xf32>
    %16 = math.exp %15 : vector<2x16xf32>
    %cst_11 = arith.constant 1.000000e+00 : f32
    %17 = vector.broadcast %cst_11 : f32 to vector<2x16xf32>
    %18 = arith.addf %17, %16 : vector<2x16xf32>
    %19 = arith.divf %17, %18 : vector<2x16xf32>
    %c0_12 = arith.constant 0 : index
    %c0_13 = arith.constant 0 : index
    %20 = vector.load %arg4[%c0_12, %c0_13] : memref<2x16xf32, #tpu.memory_space<vmem>>, vector<2x16xf32>
    tpu.vector_store %arg4[%c0_12, %c0_13], %19 {strides = array<i32>} : memref<2x16xf32, #tpu.memory_space<vmem>>, vector<2x16xf32>,
    return
  }
  func.func @transform_0(%arg0: i32) -> (i32, i32, i32) {
    %c0_i32 = arith.constant 0 : i32
    %c0_i32_0 = arith.constant 0 : i32
    %c0_i32_1 = arith.constant 0 : i32
    return %arg0, %c0_i32, %c0_i32_0 : i32, i32, i32
  }
  func.func @transform_1(%arg0: i32) -> (i32, i32) {
    %c0_i32 = arith.constant 0 : i32
    %c0_i32_0 = arith.constant 0 : i32
    %c0_i32_1 = arith.constant 0 : i32
    return %c0_i32, %c0_i32_0 : i32, i32
  }
  func.func @transform_2(%arg0: i32) -> (i32, i32) {
    %c0_i32 = arith.constant 0 : i32
    %c0_i32_0 = arith.constant 0 : i32
    %c0_i32_1 = arith.constant 0 : i32
    return %c0_i32, %c0_i32_0 : i32, i32
  }
  func.func @transform_3(%arg0: i32) -> (i32, i32) {
    %c0_i32 = arith.constant 0 : i32
    %c0_i32_0 = arith.constant 0 : i32
    return %arg0, %c0_i32 : i32, i32
  }
}

</mosaic_0001>

<bundles_post_ra>
// kernel: tpu_custom_call.1
= control target key start
LH: loop header
LB: loop body
LE: loop exit
PB: predicated region body
PF: predicated region fallthrough
CT: control target
= control target key end

     0   :  { %8 = vsyncpa [#allocation3], 0  ;;  %s458_s0 = inlined_call_operand.hbm [shape: f32[2,16,256], index: 0, kind: input, shape index: {}]   ;;  %s459_s1 = inlined_call_operand.vmem [shape: f32[2,16], index: 1, kind: input, shape index: {}]   ;;  %s460_s2 = inlined_call_operand.vmem [shape: f32[16,2], index: 2, kind: input, shape index: {}]   ;;  %s461_s3 = inlined_call_operand.hbm [shape: f32[2,16], index: 3, kind: output, shape index: {}]  }
   0x1   :  { %9 = vsyncpa [#allocation4], 0  ;;  %s396_s12 = smov [#allocation2]   ;;  %s348_s16 = scalar_lea.hbm %s458_s0, 1024 }
   0x2   :  { %s15_s13 = sshll.u32 %s396_s12, 4  ;;  %p349_p0 = scmp.ne.s32.totalorder %s458_s0, %s348_s16  ;;  %s16_s13 = int_to_ptr.vmem [resolvable:$true] %s15_s13 }
   0x3   :  { %p352_p1 = scmp.lt.u32.totalorder %s348_s16, %s458_s0 }
   0x5   :  { %p354_p2 = pnand %p352_p1, %p349_p0 }
   0x7   :  { %357 = shalt.err (!%p354_p2)
}
   0x8   :  { %s358_s21 = scalar_lea.vmem %s16_s13, 1024  ;;  %p363_p4 = scmp.lt.s32.totalorder %s16_s13, %s16_s13 }
   0x9   :  { %p359_p3 = scmp.ne.s32.totalorder %s16_s13, %s358_s21  ;;  %p364_p5 = scmp.lt.s32.totalorder %s358_s21, %s358_s21 }
   0xb   :  { %p365_p6 = por %p364_p5, %p363_p4 }
   0xd   :  { %p366_p7 = pnand %p365_p6, %p359_p3 }
   0xf   :  { %369 = shalt.err (!%p366_p7)
}
  0x10   :  { %s397_s22 = smov 256   ;;  %s398_s23 = smov 16  }
  0x11   :  { %21 = dma.hbm_to_vmem [thread:$0]  %s458_s0, 1024, %s16_s13, [#allocation3], %s397_s22, %s397_s22, %s398_s23  }
  0x12   :  { %392 = dma.done.wait [#allocation3], 1024  }
  0x13   :  { %393 = vsyncadd [#allocation3], 4294966272  ;;  %v33_v0 = vld [vmem:[#allocation2 + $0x20] sm:$0xff]  ;;  %v34_v1 = vld [vmem:[#allocation2 + $0x28] sm:$0xff]  ;;  %v399_v16 = vmov 0.0   ;;  %vm125_vm0 = vcmask 130048   ;;  %v70_v19 = vlaneseq }
  0x14   :  { %v29_v2 = vld [vmem:[#allocation2] sm:$0xff]  ;;  %v43_v3 = vadd.f32 %v34_v1, %v33_v0  ;;  %v30_v4 = vld [vmem:[#allocation2 + $0x8] sm:$0xff]  ;;  %v35_v5 = vld [vmem:[#allocation2 + $0x30] sm:$0xff]  ;;  %v60_v15 = vmax.f32 %v33_v0, %v34_v1  ;;  %321 = vmatprep.subr.mxu0 %v399_v16  ;;  %vm400_vm1 = vmmov 0   ;;  %v401_v18 = vmov 0.0|0.0   ;;  %s402_s30 = smov [#allocation5]  }
  0x15   :  { %v36_v6 = vld [vmem:[#allocation2 + $0x38] sm:$0xff]  ;;  %v37_v7 = vadd.f32 %v30_v4, %v29_v2  ;;  %v31_v8 = vld [vmem:[#allocation2 + $0x10] sm:$0xff]  ;;  %v54_v13 = vmax.f32 %v29_v2, %v30_v4  ;;  %v122_v17 = vld [vmem:[%s459_s1] sm:$0x3]  ;;  %323 = vmatprep.mubr.msk.f32.mxu0 %vm400_vm1, %v399_v16  ;;  %330 = vmatprep.mubr.msk.f32.mxu1 %vm400_vm1, %v399_v16  ;;  %v71_v20 = vand.u32 127, %v70_v19  ;;  %v73_v24 = vshrl.u32 %v70_v19, 7 }
  0x16   :  { %v32_v9 = vld [vmem:[#allocation2 + $0x18] sm:$0xff]  ;;  %44 = vadd.xlane.f32.xlu1 %v43_v3  ;;  %v46_v10 = vadd.f32 %v36_v6, %v35_v5  ;;  %v63_v14 = vmax.f32 %v35_v5, %v36_v6  ;;  %322 = vmatpush3.xpose.msk.msra.mxu0 %vm125_vm0, %v122_v17  ;;  %vm81_vm2 = vcmask 130112   ;;  %vm92_vm3 = vcmask 1041409   ;;  %v123_v52 = vld [vmem:[%s460_s2] sm:$0xff]  ;;  %v124_v53 = vld [vmem:[%s460_s2 + $0x8] sm:$0xff]  ;;  %s301_s4 = sshll.u32 %s402_s30, 4  ;;  %s302_s4 = int_to_ptr.vmem [resolvable:$true] %s301_s4 }
  0x17   :  { %38 = vadd.xlane.f32.xlu0 %v37_v7  ;;  %v40_v11 = vadd.f32 %v32_v9, %v31_v8  ;;  %v57_v12 = vmax.f32 %v31_v8, %v32_v9  ;;  %333 = vmatprep.subr.bf16.mxu1 %v401_v18  ;;  %v76_v23 = vadd.s32 4294967288, %v71_v20  ;;  %v74_v30 = vsub.s32 %v71_v20, %v73_v24  ;;  %s370_s2 = scalar_lea.vmem %s302_s4, 32  ;;  %p375_p9 = scmp.lt.s32.totalorder %s302_s4, %s302_s4 }
  0x18   :  { %vm117_vm4 = vcmask 1043459   ;;  %vm120_vm5 = vcmask 1041408   ;;  %vm207_vm6 = vcmask 15360   ;;  %v334_v54 = vpack.c.bf16 %v124_v53, %v123_v52  ;;  %p371_p8 = scmp.ne.s32.totalorder %s302_s4, %s370_s2  ;;  %p376_p10 = scmp.lt.s32.totalorder %s370_s2, %s370_s2 }
  0x19   :  { %v79_v27 = vsub.s32 %v76_v23, %v73_v24  ;;  %vm335_vm7 = vmpackc.low %vm207_vm6, %vm207_vm6  ;;  %vm293_vm8 = vcmask 123904  }
  0x1a   :  { %47 = vadd.xlane.f32.xlu1 %v46_v10  ;;  %336 = vmatpush3.bf16.xpose.msk.msra.mxu1 %vm335_vm7, %v334_v54  ;;  %p377_p11 = por %p376_p10, %p375_p9 }
  0x1b   :  { %41 = vadd.xlane.f32.xlu0 %v40_v11 }
  0x1c   :  { %p378_p12 = pnand %p377_p11, %p371_p8 }
  0x1e   :  { %58 = vmax.xlane.f32.xlu1 %v57_v12 }
  0x1f   :  { %55 = vmax.xlane.f32.xlu0 %v54_v13 }
  0x22   :  { %64 = vmax.xlane.f32.xlu1 %v63_v14 }
  0x23   :  { %61 = vmax.xlane.f32.xlu0 %v60_v15 }
  0xa3   :  { %v45_v21 = vpop.xlane.xlu1 %44 }
  0xa4   :  { %v39_v22 = vpop.xlane.xlu0 %38  ;;  %v52_v31 = vmul.f32 0.00390625, %v45_v21 }
  0xa5   :  { %v50_v32 = vmul.f32 0.00390625, %v39_v22 }
  0xa6   :  { %v86_v37 = vrot.slane %v52_v31, %v74_v30 }
  0xa7   :  { %v48_v25 = vpop.xlane.xlu1 %47  ;;  %v75_v38 = vrot.slane %v50_v32, %v74_v30 }
  0xa8   :  { %v42_v26 = vpop.xlane.xlu0 %41  ;;  %v53_v28 = vmul.f32 0.00390625, %v48_v25 }
  0xa9   :  { %v51_v29 = vmul.f32 0.00390625, %v42_v26 }
  0xaa   :  { %v90_v35 = vrot.slane %v53_v28, %v79_v27 }
  0xab   :  { %v59_v33 = vpop.xlane.xlu1 %58  ;;  %v80_v36 = vrot.slane %v51_v29, %v79_v27 }
  0xac   :  { %v56_v34 = vpop.xlane.xlu0 %55  ;;  %v106_v39 = vrot.slane %v59_v33, %v79_v27  ;;  %v91_v44 = vsel %vm81_vm2, %v90_v35, %v86_v37 }
  0xad   :  { %v102_v40 = vrot.slane %v56_v34, %v74_v30  ;;  %v82_v45 = vsel %vm81_vm2, %v80_v36, %v75_v38 }
  0xae   :  { %v93_v49 = vsel %vm92_vm3, %v91_v44, %v82_v45 }
  0xaf   :  { %v65_v41 = vpop.xlane.xlu1 %64  ;;  %v107_v47 = vsel %vm81_vm2, %v106_v39, %v102_v40 }
  0xb0   :  { %v115_v42 = vrot.slane %v65_v41, %v79_v27  ;;  %v62_v43 = vpop.xlane.xlu0 %61 }
  0xb1   :  { %v111_v46 = vrot.slane %v62_v43, %v74_v30 }
  0xb3   :  { %v116_v48 = vsel %vm81_vm2, %v115_v42, %v111_v46 }
  0xb4   :  { %v118_v50 = vsel %vm117_vm4, %v116_v48, %v107_v47 }
  0xb5   :  { %v121_v51 = vsel %vm120_vm5, %v93_v49, %v118_v50 }
  0xb6   :  { %324 = vmatmul.mubr.msk.f32.vlgmr.msra.gmra.mrb[0].mxu0 %vm125_vm0, %v121_v51 }
 0x189   :  { %v198_v55 = vpop.f32.mrb[0].mxu0 }
 0x18a   :  { %v202_v56 = vmax.f32 %v198_v55, 0.0  ;;  %v325_v57 = vpop.f32.mrb[1].mxu0 }
 0x18c   :  { %v204_v58 = vrot.slane %v202_v56, 2 }
 0x18e   :  { %v206_v59 = vadd.f32 %v204_v58, %v202_v56 }
 0x190   :  { %331 = vmatmul.mubr.msk.f32.vlgmr.msra.gmra.mrb[0].mxu1 %vm207_vm6, %v206_v59 }
 0x263   :  { %v283_v60 = vpop.f32.mrb[0].mxu1 }
 0x264   :  { %v315_v61 = vmul.f32 -1.442695, %v283_v60  ;;  %v332_v62 = vpop.f32.mrb[1].mxu1 }
 0x266   :  { %344 = vpow2.f32 %v315_v61 }
 0x270   :  { %v345_v63 = vpop.eup %344 }
 0x271   :  { %v290_v0 = vadd.f32 1.0, %v345_v63 }
 0x273   :  { %346 = vrcp.f32 %v290_v0 }
 0x27d   :  { %v347_v1 = vpop.eup %346 }
 0x27e   :  { %294 = vst.msk [vmem:[#allocation5] sm:$0x3] %vm293_vm8, %v347_v1 }
 0x27f   :  { %381 = shalt.err (!%p378_p12)
}
 0x280   :  { %s382_s7 = scalar_lea.hbm %s461_s3, 32 }
 0x281   :  { %p383_p13 = scmp.ne.s32.totalorder %s461_s3, %s382_s7  ;;  %p386_p0 = scmp.lt.u32.totalorder %s382_s7, %s461_s3 }
 0x283   :  { %p388_p1 = pnand %p386_p0, %p383_p13 }
 0x285   :  { %391 = shalt.err (!%p388_p1)
}
 0x286   :  { %304 = dma.vmem_to_hbm [thread:$0]  %s302_s4, 32, %s461_s3, [#allocation4]  }
 0x287   :  { %394 = dma.done.wait [#allocation4], 32  }
 0x288   :  { %395 = vsyncadd [#allocation4], 4294967264 }
 0x289   :  { %308 = vsyncpa [#allocation3], 1 }
 0x28a   :  { %309 = vsyncpa [#allocation4], 1 }

</bundles_post_ra>
